<compile_context>
chip_gen: v7x
topology: tpu7x:2x2x1
jax: 0.10.0
libtpu: 0.0.40
codegen_flags: <defaults>
</compile_context>

<pallas_src>
import jax
import jax.numpy as jnp
from jax.experimental import pallas as pl
from jax.experimental.pallas import tpu as pltpu


def _round_up(v, m):
    return (v + m - 1) // m * m


def _fit_tile(requested, n_pad):
    """Largest multiple of 128 <= requested that divides n_pad (>= 128)."""
    t = max(min(requested, n_pad) // 128 * 128, 128)
    while n_pad % t != 0:
        t -= 128
    return t


def gcn_kernel(a_ref, h_ref, o_ref):
    """grid = (row tiles [parallel], reduction tiles over N [arbitrary]).

    o_ref (f32, block (tile_i, Cout_pad), index_map (i, 0)) is resident across the
    k axis and doubles as the accumulator.
    """
    k = pl.program_id(1)

    @pl.when(k == 0)
    def _():
        o_ref[...] = jnp.zeros_like(o_ref)

    # out[i-block] += A_hat[i-block, k-block] @ H[k-block]   (bf16 MXU, f32 accumulate)
    o_ref[...] += jnp.dot(a_ref[...], h_ref[...],
                          preferred_element_type=jnp.float32)


def gcn_conv(x, edge_index, weight, bias, *, tile_i=512, tile_k=2048):
    """Forward pass of the reference GCNConv.

    x:          [N, C_in]  float32
    edge_index: [2, E]     int32  (row = target node, col = source node)
    weight:     [C_out, C_in]  (nn.Linear convention)
    bias:       [C_out]
    returns     [N, C_out] float32
    """
    N, Cin = x.shape
    Cout = weight.shape[0]

    # --- JAX glue: self-loops, degree, symmetric normalization (O(E) scatter) ---
    selfconn = jnp.stack([jnp.arange(N, dtype=edge_index.dtype)] * 2, axis=0)
    ei = jnp.concatenate([edge_index, selfconn], axis=1)
    row, col = ei[0], ei[1]

    deg = jnp.zeros((N,), jnp.float32).at[row].add(1.0)   # deg >= 1 (self-loops)
    dis = deg ** -0.5
    norm = dis[row] * dis[col]

    # --- padding / tiling ---
    Cout_pad = max(_round_up(Cout, 128), 128)            # lane-dense output width
    N_pad = max(_round_up(N, 128), 128)                  # node axis, tileable by 128
    tile_i = _fit_tile(tile_i, N_pad)                    # parallel output-row tile
    tile_k = _fit_tile(tile_k, N_pad)                    # reduction tile over N
    Caug = Cin + 1                                       # ones column carries bias

    # Normalized adjacency, duplicate edges sum; scatter-add directly in bf16
    # (no N_pad^2 f32 intermediate + separate cast pass).
    a_hat = jnp.zeros((N_pad, N_pad), jnp.bfloat16)
    a_hat = a_hat.at[row, col].add(norm.astype(jnp.bfloat16))

    # H = [x | 1] @ [[W^T], [b]]  ==  x @ W^T + b, computed in f32 then cast once.
    x_aug = jnp.zeros((N_pad, Caug), jnp.float32)
    x_aug = x_aug.at[:N, :Cin].set(x.astype(jnp.float32))
    x_aug = x_aug.at[:N, Cin].set(1.0)

    w_aug = jnp.zeros((Caug, Cout_pad), jnp.float32)
    w_aug = w_aug.at[:Cin, :Cout].set(weight.T.astype(jnp.float32))
    w_aug = w_aug.at[Cin, :Cout].set(bias.astype(jnp.float32))

    h = (x_aug @ w_aug).astype(jnp.bfloat16)             # [N_pad, Cout_pad]

    grid = (N_pad // tile_i, N_pad // tile_k)

    # Double-buffered A block + H block + out block; budget against v7x's 64 MiB.
    vmem_bytes = (2 * tile_i * tile_k * 2        # A_hat bf16
                  + 2 * tile_k * Cout_pad * 2    # H bf16
                  + 2 * tile_i * Cout_pad * 4)   # out f32
    vmem_limit = min(max(vmem_bytes + (8 << 20), 32 << 20), 100 << 20)

    flops = 2 * N_pad * N_pad * Cout_pad
    bytes_accessed = (a_hat.size * 2
                      + h.size * 2 * grid[0]     # H re-streamed per row tile
                      + N_pad * Cout_pad * 4)

    out = pl.pallas_call(
        gcn_kernel,
        out_shape=jax.ShapeDtypeStruct((N_pad, Cout_pad), jnp.float32),
        grid_spec=pltpu.PrefetchScalarGridSpec(
            num_scalar_prefetch=0,
            grid=grid,
            in_specs=[
                pl.BlockSpec((tile_i, tile_k), lambda i, k: (i, k)),      # A_hat block
                pl.BlockSpec((tile_k, Cout_pad), lambda i, k: (k, 0)),    # H k-block
            ],
            out_specs=pl.BlockSpec((tile_i, Cout_pad), lambda i, k: (i, 0)),
        ),
        compiler_params=pltpu.CompilerParams(
            dimension_semantics=("parallel", "arbitrary"),
            vmem_limit_bytes=vmem_limit,
        ),
        cost_estimate=pl.CostEstimate(flops=flops, transcendentals=0,
                                      bytes_accessed=bytes_accessed),
    )(a_hat, h)

    return out[:N, :Cout]


def gcn_conv_reference(x, edge_index, weight, bias):
    """Pure-JAX f32 reference mirroring the PyTorch forward, for verification."""
    N = x.shape[0]
    selfconn = jnp.stack([jnp.arange(N, dtype=edge_index.dtype)] * 2, axis=0)
    ei = jnp.concatenate([edge_index, selfconn], axis=1)
    row, col = ei[0], ei[1]
    x_lin = x @ weight.T + bias
    deg = jnp.zeros((N,), jnp.float32).at[row].add(1.0)
    dis = deg ** -0.5
    norm = dis[row] * dis[col]
    tar = norm[:, None] * x_lin[col]
    mask = (jnp.arange(N)[:, None] == row[None, :]).astype(jnp.float32)
    return mask @ tar


if __name__ == "__main__":
    # Small deterministic problem: N=16 nodes, C_in=8, C_out=32, E=48 edges.
    N, Cin, Cout, E = 16, 8, 32, 48
    key = jax.random.PRNGKey(0)
    kx, ke, kw, kb = jax.random.split(key, 4)

    x = jax.random.normal(kx, (N, Cin), dtype=jnp.float32)
    edge_index = jax.random.randint(ke, (2, E), 0, N, dtype=jnp.int32)

    # nn.Linear(in_channel, out_channel) init: uniform(-k, k), k = 1/sqrt(Cin)
    k = 1.0 / (Cin ** 0.5)
    weight = jax.random.uniform(kw, (Cout, Cin), minval=-k, maxval=k, dtype=jnp.float32)
    bias = jax.random.uniform(kb, (Cout,), minval=-k, maxval=k, dtype=jnp.float32)

    out = gcn_conv(x, edge_index, weight, bias)
    out = jax.block_until_ready(out)

    ref = gcn_conv_reference(x, edge_index, weight, bias)
    assert out.shape == (N, Cout)
    # bf16 operands on the aggregation matmul -> relaxed tolerance vs f32 reference.
    assert jnp.allclose(out, ref, atol=5e-2, rtol=5e-2), "mismatch vs reference"

    print("KERNEL_OK")
</pallas_src>

<mosaic_0001>
module attributes {stable_mosaic.version = 11 : i64} {
  func.func @gcn_kernel(%arg0: i32, %arg1: i32, %arg2: memref<128x128xbf16, #tpu.memory_space<vmem>>, %arg3: memref<128x128xbf16, #tpu.memory_space<vmem>>, %arg4: memref<128x128xf32, #tpu.memory_space<vmem>>) attributes {dimension_semantics = [#tpu.dimension_semantics<parallel>, #tpu.dimension_semantics<arbitrary>], iteration_bounds = array<i64: 1, 1>, scalar_prefetch = 0 : i64, scratch_operands = 0 : i64, tpu.core_type = #tpu.core_type<tc>, window_params = [{transform_indices = @transform_0, window_bounds = array<i64: 128, 128>}, {transform_indices = @transform_1, window_bounds = array<i64: 128, 128>}, {transform_indices = @transform_2, window_bounds = array<i64: 128, 128>}]} {
    %c0_i32 = arith.constant 0 : i32
    %0 = arith.cmpi eq, %arg1, %c0_i32 : i32
    %1 = arith.extui %0 : i1 to i32
    %c0_i32_0 = arith.constant 0 : i32
    %2 = arith.cmpi ne, %1, %c0_i32_0 : i32
    scf.if %2 {
      %cst_8 = arith.constant 0.000000e+00 : f32
      %9 = vector.broadcast %cst_8 : f32 to vector<128x128xf32>
      %c0_9 = arith.constant 0 : index
      %c0_10 = arith.constant 0 : index
      %10 = vector.load %arg4[%c0_9, %c0_10] : memref<128x128xf32, #tpu.memory_space<vmem>>, vector<128x128xf32>
      tpu.vector_store %arg4[%c0_9, %c0_10], %9 {strides = array<i32>} : memref<128x128xf32, #tpu.memory_space<vmem>>, vector<128x128xf32>,
    } else {
    }
    %c0 = arith.constant 0 : index
    %c0_1 = arith.constant 0 : index
    %3 = vector.load %arg4[%c0, %c0_1] : memref<128x128xf32, #tpu.memory_space<vmem>>, vector<128x128xf32>
    %c0_2 = arith.constant 0 : index
    %c0_3 = arith.constant 0 : index
    %4 = vector.load %arg2[%c0_2, %c0_3] : memref<128x128xbf16, #tpu.memory_space<vmem>>, vector<128x128xbf16>
    %c0_4 = arith.constant 0 : index
    %c0_5 = arith.constant 0 : index
    %5 = vector.load %arg3[%c0_4, %c0_5] : memref<128x128xbf16, #tpu.memory_space<vmem>>, vector<128x128xbf16>
    %cst = arith.constant dense<0.000000e+00> : vector<128x128xf32>
    %6 = tpu.matmul %4, %5, %cst {dimension_numbers = #tpu.dot_dimension_numbers<[1], [0], [0], [1], [0, 0, 1, 1], [], []>} : vector<128x128xbf16>, vector<128x128xbf16>, vector<128x128xf32> -> vector<128x128xf32>
    %7 = arith.addf %3, %6 : vector<128x128xf32>
    %c0_6 = arith.constant 0 : index
    %c0_7 = arith.constant 0 : index
    %8 = vector.load %arg4[%c0_6, %c0_7] : memref<128x128xf32, #tpu.memory_space<vmem>>, vector<128x128xf32>
    tpu.vector_store %arg4[%c0_6, %c0_7], %7 {strides = array<i32>} : memref<128x128xf32, #tpu.memory_space<vmem>>, vector<128x128xf32>,
    return
  }
  func.func @transform_0(%arg0: i32, %arg1: i32) -> (i32, i32) {
    %c0_i32 = arith.constant 0 : i32
    return %arg0, %arg1 : i32, i32
  }
  func.func @transform_1(%arg0: i32, %arg1: i32) -> (i32, i32) {
    %c0_i32 = arith.constant 0 : i32
    %c0_i32_0 = arith.constant 0 : i32
    return %arg1, %c0_i32 : i32, i32
  }
  func.func @transform_2(%arg0: i32, %arg1: i32) -> (i32, i32) {
    %c0_i32 = arith.constant 0 : i32
    %c0_i32_0 = arith.constant 0 : i32
    return %arg0, %c0_i32 : i32, i32
  }
}

</mosaic_0001>

<bundles_post_ra>
// kernel: tpu_custom_call.1
= control target key start
LH: loop header
LB: loop body
LE: loop exit
PB: predicated region body
PF: predicated region fallthrough
CT: control target
= control target key end

     0   :  { %7 = vsyncpa [#allocation3], 0  ;;  %s586_s0 = inlined_call_operand.hbm [shape: bf16[128,128], index: 0, kind: input, shape index: {}]   ;;  %s587_s1 = inlined_call_operand.hbm [shape: bf16[128,128], index: 1, kind: input, shape index: {}]   ;;  %s588_s2 = inlined_call_operand.hbm [shape: f32[128,128], index: 2, kind: output, shape index: {}]  }
   0x1   :  { %8 = vsyncpa [#allocation6], 0 }
   0x2   :  { %9 = vsyncpa [#allocation4], 0  ;;  %s528_s9 = smov [#allocation2]   ;;  %s456_s13 = scalar_lea.hbm %s586_s0, 1024 }
   0x3   :  { %s15_s10 = sshll.u32 %s528_s9, 4  ;;  %p457_p0 = scmp.ne.s32.totalorder %s586_s0, %s456_s13  ;;  %s16_s10 = int_to_ptr.vmem [resolvable:$true] %s15_s10 }
   0x4   :  { %p460_p1 = scmp.lt.u32.totalorder %s456_s13, %s586_s0 }
   0x6   :  { %p462_p2 = pnand %p460_p1, %p457_p0 }
   0x8   :  { %465 = shalt.err (!%p462_p2)
}
   0x9   :  { %s466_s18 = scalar_lea.vmem %s16_s10, 1024  ;;  %p471_p4 = scmp.lt.s32.totalorder %s16_s10, %s16_s10 }
   0xa   :  { %p467_p3 = scmp.ne.s32.totalorder %s16_s10, %s466_s18  ;;  %p472_p5 = scmp.lt.s32.totalorder %s466_s18, %s466_s18 }
   0xc   :  { %p473_p6 = por %p472_p5, %p471_p4 }
   0xe   :  { %p474_p7 = pnand %p473_p6, %p467_p3 }
  0x10   :  { %477 = shalt.err (!%p474_p7)
}
  0x11   :  { %s529_s19 = smov 64   ;;  %s530_s20 = smov 4  }
  0x12   :  { %21 = dma.hbm_to_vmem [thread:$0]  %s586_s0, 1024, %s16_s10, [#allocation3], %s529_s19, %s529_s19, %s530_s20  }
  0x13   :  { %s531_s23 = smov [#allocation5]   ;;  %s478_s27 = scalar_lea.hbm %s587_s1, 1024 }
  0x14   :  { %s27_s24 = sshll.u32 %s531_s23, 4  ;;  %p479_p8 = scmp.ne.s32.totalorder %s587_s1, %s478_s27  ;;  %s28_s24 = int_to_ptr.vmem [resolvable:$true] %s27_s24 }
  0x15   :  { %p482_p9 = scmp.lt.u32.totalorder %s478_s27, %s587_s1 }
  0x17   :  { %p484_p10 = pnand %p482_p9, %p479_p8 }
  0x19   :  { %487 = shalt.err (!%p484_p10)
}
  0x1a   :  { %s488_s4 = scalar_lea.vmem %s28_s24, 1024  ;;  %p493_p12 = scmp.lt.s32.totalorder %s28_s24, %s28_s24 }
  0x1b   :  { %p489_p11 = scmp.ne.s32.totalorder %s28_s24, %s488_s4  ;;  %p494_p13 = scmp.lt.s32.totalorder %s488_s4, %s488_s4 }
  0x1d   :  { %p495_p0 = por %p494_p13, %p493_p12 }
  0x1f   :  { %p496_p1 = pnand %p495_p0, %p489_p11 }
  0x21   :  { %499 = shalt.err (!%p496_p1)
}
  0x22   :  { %33 = dma.hbm_to_vmem [thread:$0]  %s587_s1, 1024, %s28_s24, [#allocation6], %s529_s19, %s529_s19, %s530_s20  }
  0x23   :  { %522 = dma.done.wait [#allocation3], 1024  }
  0x24   :  { %523 = vsyncadd [#allocation3], 4294966272 }
  0x25   :  { %524 = dma.done.wait [#allocation6], 1024  }
  0x26   :  { %525 = vsyncadd [#allocation6], 4294966272  ;;  %v440_v0 = vld [vmem:[#allocation5] sm:$0xff]   ;;  %v441_v1 = vld [vmem:[#allocation5 + $0x8] sm:$0xff]   ;;  %s532_s1 = smov [#allocation7]  }
  0x27   :  { %384 = vmatprep.subr.bf16.mxu0 %v440_v0  ;;  %416 = vmatprep.subr.bf16.mxu1 %v440_v0  ;;  %v442_v2 = vld [vmem:[#allocation5 + $0x10] sm:$0xff]   ;;  %v443_v3 = vld [vmem:[#allocation5 + $0x18] sm:$0xff]   ;;  %v448_v4 = vld [vmem:[#allocation2] sm:$0xff]   ;;  %s339_s6 = sshll.u32 %s532_s1, 4  ;;  %s340_s6 = int_to_ptr.vmem [resolvable:$true] %s339_s6 }
  0x28   :  { %385 = vmatpush3.bf16.msra.mxu0 %v440_v0  ;;  %424 = vmatpush3.bf16.msra.mxu1 %v440_v0  ;;  %v449_v5 = vld [vmem:[#allocation2 + $0x20] sm:$0xff]   ;;  %v445_v7 = vld [vmem:[#allocation5 + $0x28] sm:$0xff]   ;;  %v446_v8 = vld [vmem:[#allocation5 + $0x30] sm:$0xff]   ;;  %s500_s7 = scalar_lea.vmem %s340_s6, 2048  ;;  %p505_p3 = scmp.lt.s32.totalorder %s340_s6, %s340_s6 }
  0x29   :  { %386 = vmatprep.subr.bf16.mxu0 %v441_v1  ;;  %417 = vmatprep.subr.bf16.mxu1 %v441_v1  ;;  %v444_v6 = vld [vmem:[#allocation5 + $0x20] sm:$0xff]   ;;  %v447_v9 = vld [vmem:[#allocation5 + $0x38] sm:$0xff]   ;;  %v450_v10 = vld [vmem:[#allocation2 + $0x8] sm:$0xff]   ;;  %p501_p2 = scmp.ne.s32.totalorder %s340_s6, %s500_s7  ;;  %p506_p4 = scmp.lt.s32.totalorder %s500_s7, %s500_s7 }
  0x2a   :  { %400 = vmatprep.mubr.bf16.mxu0 %v448_v4  ;;  %408 = vmatprep.mubr.bf16.mxu1 %v449_v5  ;;  %v451_v11 = vld [vmem:[#allocation2 + $0x28] sm:$0xff]   ;;  %v452_v12 = vld [vmem:[#allocation2 + $0x10] sm:$0xff]   ;;  %v454_v14 = vld [vmem:[#allocation2 + $0x18] sm:$0xff]  }
  0x2b   :  { %v453_v13 = vld [vmem:[#allocation2 + $0x30] sm:$0xff]   ;;  %v455_v15 = vld [vmem:[#allocation2 + $0x38] sm:$0xff]   ;;  %p507_p5 = por %p506_p4, %p505_p3 }
  0x2c   :  { %387 = vmatpush3.bf16.msra.mxu0 %v441_v1  ;;  %425 = vmatpush3.bf16.msra.mxu1 %v441_v1 }
  0x2d   :  { %388 = vmatprep.subr.bf16.mxu0 %v442_v2  ;;  %418 = vmatprep.subr.bf16.mxu1 %v442_v2  ;;  %p508_p6 = pnand %p507_p5, %p501_p2 }
  0x30   :  { %389 = vmatpush3.bf16.msra.mxu0 %v442_v2  ;;  %426 = vmatpush3.bf16.msra.mxu1 %v442_v2 }
  0x31   :  { %390 = vmatprep.subr.bf16.mxu0 %v443_v3  ;;  %419 = vmatprep.subr.bf16.mxu1 %v443_v3 }
  0x34   :  { %391 = vmatpush3.bf16.msra.mxu0 %v443_v3  ;;  %427 = vmatpush3.bf16.msra.mxu1 %v443_v3 }
  0x35   :  { %392 = vmatprep.subr.bf16.mxu0 %v444_v6  ;;  %420 = vmatprep.subr.bf16.mxu1 %v444_v6 }
  0x38   :  { %393 = vmatpush3.bf16.msra.mxu0 %v444_v6  ;;  %428 = vmatpush3.bf16.msra.mxu1 %v444_v6 }
  0x39   :  { %394 = vmatprep.subr.bf16.mxu0 %v445_v7  ;;  %421 = vmatprep.subr.bf16.mxu1 %v445_v7 }
  0x3c   :  { %395 = vmatpush3.bf16.msra.mxu0 %v445_v7  ;;  %429 = vmatpush3.bf16.msra.mxu1 %v445_v7 }
  0x3d   :  { %396 = vmatprep.subr.bf16.mxu0 %v446_v8  ;;  %422 = vmatprep.subr.bf16.mxu1 %v446_v8 }
  0x40   :  { %397 = vmatpush3.bf16.msra.mxu0 %v446_v8  ;;  %430 = vmatpush3.bf16.msra.mxu1 %v446_v8 }
  0x41   :  { %398 = vmatprep.subr.bf16.mxu0 %v447_v9  ;;  %423 = vmatprep.subr.bf16.mxu1 %v447_v9 }
  0x44   :  { %399 = vmatpush3.bf16.msra.mxu0 %v447_v9  ;;  %431 = vmatpush3.bf16.msra.mxu1 %v447_v9 }
  0x47   :  { %401 = vmatmul.mubr.bf16.vlgmr.msra.gmra.mrb[0].mxu0 %v450_v10  ;;  %409 = vmatmul.mubr.bf16.vlgmr.msra.gmra.mrb[0].mxu1 %v451_v11 }
  0x48   :  { %404 = vmatprep.mubr.bf16.mxu0 %v452_v12  ;;  %412 = vmatprep.mubr.bf16.mxu1 %v453_v13 }
  0x4f   :  { %405 = vmatmul.mubr.bf16.gmra.mrb[4].mxu0 %v454_v14  ;;  %413 = vmatmul.mubr.bf16.gmra.mrb[4].mxu1 %v455_v15 }
 0x11a   :  { %v402_v16 = vpop.f32.mrb[0].mxu0  ;;  %v410_v17 = vpop.f32.mrb[0].mxu1 }
 0x11b   :  { %v239_v18 = vpop.f32.mrb[1].mxu0  ;;  %v271_v19 = vpop.f32.mrb[1].mxu1  ;;  %320 = vst [vmem:[#allocation7 + $0x10] sm:$0xff] %v402_v16  ;;  %328 = vst [vmem:[#allocation7 + $0x50] sm:$0xff] %v410_v17 }
 0x11c   :  { %v403_v20 = vpop.f32.mrb[2].mxu0  ;;  %v411_v21 = vpop.f32.mrb[2].mxu1  ;;  %318 = vst [vmem:[#allocation7] sm:$0xff] %v239_v18  ;;  %326 = vst [vmem:[#allocation7 + $0x40] sm:$0xff] %v271_v19 }
 0x11d   :  { %v242_v22 = vpop.f32.mrb[3].mxu0  ;;  %v274_v23 = vpop.f32.mrb[3].mxu1  ;;  %321 = vst [vmem:[#allocation7 + $0x18] sm:$0xff] %v403_v20  ;;  %329 = vst [vmem:[#allocation7 + $0x58] sm:$0xff] %v411_v21 }
 0x11e   :  { %319 = vst [vmem:[#allocation7 + $0x8] sm:$0xff] %v242_v22  ;;  %327 = vst [vmem:[#allocation7 + $0x48] sm:$0xff] %v274_v23 }
 0x122   :  { %v406_v24 = vpop.f32.mrb[4].mxu0  ;;  %v414_v25 = vpop.f32.mrb[4].mxu1 }
 0x123   :  { %v255_v26 = vpop.f32.mrb[5].mxu0  ;;  %v287_v27 = vpop.f32.mrb[5].mxu1  ;;  %324 = vst [vmem:[#allocation7 + $0x30] sm:$0xff] %v406_v24  ;;  %332 = vst [vmem:[#allocation7 + $0x70] sm:$0xff] %v414_v25 }
 0x124   :  { %v407_v28 = vpop.f32.mrb[6].mxu0  ;;  %v415_v29 = vpop.f32.mrb[6].mxu1  ;;  %322 = vst [vmem:[#allocation7 + $0x20] sm:$0xff] %v255_v26  ;;  %330 = vst [vmem:[#allocation7 + $0x60] sm:$0xff] %v287_v27 }
 0x125   :  { %v258_v30 = vpop.f32.mrb[7].mxu0  ;;  %v290_v31 = vpop.f32.mrb[7].mxu1  ;;  %325 = vst [vmem:[#allocation7 + $0x38] sm:$0xff] %v407_v28  ;;  %333 = vst [vmem:[#allocation7 + $0x78] sm:$0xff] %v415_v29 }
 0x126   :  { %323 = vst [vmem:[#allocation7 + $0x28] sm:$0xff] %v258_v30  ;;  %331 = vst [vmem:[#allocation7 + $0x68] sm:$0xff] %v290_v31 }
 0x127   :  { %511 = shalt.err (!%p508_p6)
}
 0x128   :  { %s512_s10 = scalar_lea.hbm %s588_s2, 2048 }
 0x129   :  { %p513_p7 = scmp.ne.s32.totalorder %s588_s2, %s512_s10  ;;  %p516_p8 = scmp.lt.u32.totalorder %s512_s10, %s588_s2 }
 0x12b   :  { %p518_p9 = pnand %p516_p8, %p513_p7 }
 0x12d   :  { %521 = shalt.err (!%p518_p9)
}
 0x12e   :  { %s533_s15 = smov 128   ;;  %s534_s16 = smov 8  }
 0x12f   :  { %345 = dma.vmem_to_hbm [thread:$0]  %s340_s6, 2048, %s588_s2, [#allocation4], %s533_s15, %s533_s15, %s534_s16  }
 0x130   :  { %526 = dma.done.wait [#allocation4], 2048  }
 0x131   :  { %527 = vsyncadd [#allocation4], 4294965248 }
 0x132   :  { %349 = vsyncpa [#allocation3], 1 }
 0x133   :  { %350 = vsyncpa [#allocation6], 1 }
 0x134   :  { %351 = vsyncpa [#allocation4], 1 }

</bundles_post_ra>
